<compile_context>
chip_gen: v7x
topology: tpu7x:2x2x1
jax: 0.10.0
libtpu: 0.0.40
codegen_flags: <defaults>
</compile_context>

<pallas_src>
import jax
import jax.numpy as jnp
from jax.experimental import pallas as pl
from jax.experimental.pallas import tpu as pltpu


def _round_up(x, m):
    return ((x + m - 1) // m) * m


def expert_kernel(x_ref, w1_ref, b1_ref, w2_ref, b2_ref, o_ref, acc_ref):
    """One (tm, Dp) token tile x one hidden slab of width th.

    grid = (token_tiles, h_tiles); the hidden axis is the innermost reduction
    axis.  relu(x @ W1[:, h] + b1[h]) @ W2[h, :] is accumulated into a resident
    f32 scratch; bias b2 is added and the tile stored on the last h step.
    """
    h_idx = pl.program_id(1)

    @pl.when(h_idx == 0)
    def _init():
        acc_ref[...] = jnp.zeros_like(acc_ref)

    # (tm, Dp) @ (Dp, th) -> (tm, th), f32 accumulation on the MXU.
    h = jnp.dot(x_ref[...], w1_ref[...], preferred_element_type=jnp.float32)
    h = jnp.maximum(h + b1_ref[...], 0.0)                 # f32 bias + ReLU (VPU)
    # Downcast only this (tm, th) slab for the second MXU pass; accumulate f32.
    acc_ref[...] += jnp.dot(h.astype(w2_ref.dtype), w2_ref[...],
                            preferred_element_type=jnp.float32)   # (tm, Dp)

    @pl.when(h_idx == pl.num_programs(1) - 1)
    def _finalize():
        o_ref[...] = (acc_ref[...] + b2_ref[...]).astype(o_ref.dtype)


def prepare_expert_params(w1, b1, w2, b2, *, compute_dtype=jnp.bfloat16,
                          feature_align=256, th=512):
    """Pad + cast the expert weights ONCE (hoisted out of the forward call).

    w1: (D, H), b1: (H,)/(1,H), w2: (H, D), b2: (D,)/(1,D).
    feature_align: 256 for v6e/v7x (2x256x256 MXU); use 128 on v5e.
    th: hidden-slab width streamed through VMEM per grid step.
    """
    D, H = w1.shape
    assert w2.shape == (H, D), "w2 must be (H, D)"

    Dp = _round_up(D, feature_align)
    Hp = _round_up(H, feature_align)
    th = _round_up(min(th, Hp), feature_align)
    if Hp % th:
        Hp = _round_up(Hp, th)   # extra zero hidden columns are exactly neutral

    w1_p = jnp.zeros((Dp, Hp), compute_dtype).at[:D, :H].set(w1.astype(compute_dtype))
    b1_p = jnp.zeros((1, Hp), jnp.float32).at[:, :H].set(
        jnp.reshape(b1, (1, H)).astype(jnp.float32))
    w2_p = jnp.zeros((Hp, Dp), compute_dtype).at[:H, :D].set(w2.astype(compute_dtype))
    b2_p = jnp.zeros((1, Dp), jnp.float32).at[:, :D].set(
        jnp.reshape(b2, (1, D)).astype(jnp.float32))

    return dict(w1=w1_p, b1=b1_p, w2=w2_p, b2=b2_p,
                D=D, H=H, Dp=Dp, Hp=Hp, th=th, compute_dtype=compute_dtype)


def expert_forward(x, params, *, tm=None):
    """relu(x @ w1 + b1) @ w2 + b2 for x of shape (N, D), using prepared params."""
    N, D = x.shape
    assert D == params["D"], "x feature dim does not match prepared params"
    Dp, Hp, th = params["Dp"], params["Hp"], params["th"]
    compute_dtype = params["compute_dtype"]
    out_dtype = x.dtype

    if tm is None:
        # >= 2 parallel token steps for small N (v7x has 2 TCs); bigger tiles
        # for large N to amortize the ~0.35 us per-grid-step overhead.
        tm = 256 if N > 512 else 128
    Np = _round_up(N, tm)

    # Per-call activation padding only (weights were padded once at setup).
    x_p = jnp.zeros((Np, Dp), compute_dtype).at[:N, :D].set(x.astype(compute_dtype))

    grid = (Np // tm, Hp // th)

    # Real resident-VMEM footprint (double-buffered pipelined blocks, f32 + low
    # precision copies of the intermediate, 8-sublane-padded biases) + headroom,
    # capped at 48 MiB so the same config leaves scratch headroom on v7x.
    # TODO(synk): for Dp large enough that (tm, Dp) tiles alone exceed ~48 MiB,
    # add a third grid axis tiling Dp of the output as well.
    cdt = jnp.dtype(compute_dtype).itemsize
    oit = jnp.dtype(out_dtype).itemsize
    vmem_bytes = (
        2 * tm * Dp * cdt          # x tile (2 buffers)
        + 2 * Dp * th * cdt        # W1 slab (2 buffers)
        + 2 * th * Dp * cdt        # W2 slab (2 buffers)
        + 2 * 8 * th * 4           # b1 slab, padded to 8 sublanes, f32
        + 2 * 8 * Dp * 4           # b2, padded to 8 sublanes, f32
        + 2 * tm * Dp * oit        # output tile (2 buffers)
        + tm * Dp * 4              # f32 accumulator scratch
        + tm * th * 4              # f32 intermediate h
        + tm * th * cdt            # downcast copy of h
    )
    vmem_limit = int(min(max(vmem_bytes + 4 * 1024 * 1024, 16 * 1024 * 1024),
                         48 * 1024 * 1024))

    n_token_tiles = Np // tm
    cost = pl.CostEstimate(
        flops=4 * Np * Dp * Hp,
        transcendentals=0,
        bytes_accessed=(Np * Dp * cdt                                   # x
                        + n_token_tiles * (Dp * Hp + Hp * Dp) * cdt     # streamed weights
                        + (Hp + Dp) * 4                                 # biases
                        + Np * Dp * oit),                               # output
    )

    out = pl.pallas_call(
        expert_kernel,
        out_shape=jax.ShapeDtypeStruct((Np, Dp), out_dtype),
        grid_spec=pltpu.PrefetchScalarGridSpec(
            num_scalar_prefetch=0,
            grid=grid,
            in_specs=[
                pl.BlockSpec((tm, Dp), lambda i, h: (i, 0)),   # token tile (held across h)
                pl.BlockSpec((Dp, th), lambda i, h: (0, h)),   # W1 column slab (streamed)
                pl.BlockSpec((1, th),  lambda i, h: (0, h)),   # b1 slab
                pl.BlockSpec((th, Dp), lambda i, h: (h, 0)),   # W2 row slab (streamed)
                pl.BlockSpec((1, Dp),  lambda i, h: (0, 0)),   # b2 (constant)
            ],
            out_specs=pl.BlockSpec((tm, Dp), lambda i, h: (i, 0)),
            scratch_shapes=[pltpu.VMEM((tm, Dp), jnp.float32)],
        ),
        compiler_params=pltpu.CompilerParams(
            dimension_semantics=("parallel", "arbitrary"),
            vmem_limit_bytes=vmem_limit,
        ),
        cost_estimate=cost,
    )(x_p, params["w1"], params["b1"], params["w2"], params["b2"])

    return out[:N, :D]


def reference_forward(x, w1, b1, w2, b2):
    h = jnp.maximum(x @ w1 + jnp.reshape(b1, (1, -1)), 0.0)
    return h @ w2 + jnp.reshape(b2, (1, -1))


def _make_params(key, N, D, H):
    kx, k1, k2, k3, k4 = jax.random.split(key, 5)
    x = jax.random.normal(kx, (N, D), dtype=jnp.float32)
    w1 = jax.random.normal(k1, (D, H), dtype=jnp.float32) * 0.1
    b1 = jax.random.normal(k2, (1, H), dtype=jnp.float32) * 0.1
    w2 = jax.random.normal(k3, (H, D), dtype=jnp.float32) * 0.1
    b2 = jax.random.normal(k4, (1, D), dtype=jnp.float32) * 0.1
    return x, w1, b1, w2, b2


if __name__ == "__main__":
    key = jax.random.PRNGKey(0)
    k_a, k_b, k_c = jax.random.split(key, 3)

    # Case A: Expert(input_dim=32, hidden_dim=64) applied to 16 tokens (bf16 compute).
    N, D, H = 16, 32, 64
    x, w1, b1, w2, b2 = _make_params(k_a, N, D, H)
    params = prepare_expert_params(w1, b1, w2, b2)          # pad/cast ONCE, reuse per call
    out = jax.block_until_ready(expert_forward(x, params))
    ref = reference_forward(x, w1, b1, w2, b2)
    assert out.shape == (N, D)
    assert jnp.allclose(out, ref, atol=5e-2, rtol=5e-2), "mismatch vs reference (case A)"

    # Case B: ragged token count, non-aligned feature dims, multi-step token grid
    # AND multi-slab hidden grid (th=128 -> 2 hidden steps) to exercise the
    # accumulator init/finalize path.
    N2, D2, H2 = 300, 96, 160
    x2, w12, b12, w22, b22 = _make_params(k_b, N2, D2, H2)
    params2 = prepare_expert_params(w12, b12, w22, b22, feature_align=128, th=128)
    out2 = jax.block_until_ready(expert_forward(x2, params2, tm=128))
    ref2 = reference_forward(x2, w12, b12, w22, b22)
    assert out2.shape == (N2, D2)
    assert jnp.allclose(out2, ref2, atol=5e-2, rtol=5e-2), "mismatch vs reference (case B)"

    # Case C: float32 compute path (compute_dtype is an explicit choice now).
    N3, D3, H3 = 24, 48, 80
    x3, w13, b13, w23, b23 = _make_params(k_c, N3, D3, H3)
    params3 = prepare_expert_params(w13, b13, w23, b23, compute_dtype=jnp.float32,
                                    feature_align=128, th=128)
    out3 = jax.block_until_ready(expert_forward(x3, params3))
    ref3 = reference_forward(x3, w13, b13, w23, b23)
    assert out3.shape == (N3, D3)
    assert jnp.allclose(out3, ref3, atol=5e-2, rtol=5e-2), "mismatch vs reference (case C)"

    print("KERNEL_OK")
</pallas_src>

<mosaic_0001>
module attributes {stable_mosaic.version = 11 : i64} {
  func.func @expert_kernel(%arg0: i32, %arg1: i32, %arg2: memref<128x256xbf16, #tpu.memory_space<vmem>>, %arg3: memref<256x256xbf16, #tpu.memory_space<vmem>>, %arg4: memref<1x256xf32, #tpu.memory_space<vmem>>, %arg5: memref<256x256xbf16, #tpu.memory_space<vmem>>, %arg6: memref<1x256xf32, #tpu.memory_space<vmem>>, %arg7: memref<128x256xf32, #tpu.memory_space<vmem>>, %arg8: memref<128x256xf32, #tpu.memory_space<vmem>>) attributes {dimension_semantics = [#tpu.dimension_semantics<parallel>, #tpu.dimension_semantics<arbitrary>], iteration_bounds = array<i64: 1, 1>, scalar_prefetch = 0 : i64, scratch_operands = 1 : i64, tpu.core_type = #tpu.core_type<tc>, window_params = [{transform_indices = @transform_0, window_bounds = array<i64: 128, 256>}, {transform_indices = @transform_1, window_bounds = array<i64: 256, 256>}, {transform_indices = @transform_2, window_bounds = array<i64: 1, 256>}, {transform_indices = @transform_3, window_bounds = array<i64: 256, 256>}, {pipeline_mode = #tpu.pipeline_mode<synchronous>, transform_indices = @transform_4, window_bounds = array<i64: 1, 256>}, {transform_indices = @transform_5, window_bounds = array<i64: 128, 256>}]} {
    %c0_i32 = arith.constant 0 : i32
    %0 = arith.cmpi eq, %arg1, %c0_i32 : i32
    %1 = arith.extui %0 : i1 to i32
    %c0_i32_0 = arith.constant 0 : i32
    %2 = arith.cmpi ne, %1, %c0_i32_0 : i32
    scf.if %2 {
      %cst_16 = arith.constant 0.000000e+00 : f32
      %20 = vector.broadcast %cst_16 : f32 to vector<128x256xf32>
      %c0_17 = arith.constant 0 : index
      %c0_18 = arith.constant 0 : index
      %21 = vector.load %arg8[%c0_17, %c0_18] : memref<128x256xf32, #tpu.memory_space<vmem>>, vector<128x256xf32>
      tpu.vector_store %arg8[%c0_17, %c0_18], %20 {strides = array<i32>} : memref<128x256xf32, #tpu.memory_space<vmem>>, vector<128x256xf32>,
    } else {
    }
    %c0 = arith.constant 0 : index
    %c0_1 = arith.constant 0 : index
    %3 = vector.load %arg2[%c0, %c0_1] : memref<128x256xbf16, #tpu.memory_space<vmem>>, vector<128x256xbf16>
    %c0_2 = arith.constant 0 : index
    %c0_3 = arith.constant 0 : index
    %4 = vector.load %arg3[%c0_2, %c0_3] : memref<256x256xbf16, #tpu.memory_space<vmem>>, vector<256x256xbf16>
    %cst = arith.constant dense<0.000000e+00> : vector<128x256xf32>
    %5 = tpu.matmul %3, %4, %cst {dimension_numbers = #tpu.dot_dimension_numbers<[1], [0], [0], [1], [0, 0, 1, 1], [], []>} : vector<128x256xbf16>, vector<256x256xbf16>, vector<128x256xf32> -> vector<128x256xf32>
    %c0_4 = arith.constant 0 : index
    %c0_5 = arith.constant 0 : index
    %6 = vector.load %arg4[%c0_4, %c0_5] : memref<1x256xf32, #tpu.memory_space<vmem>>, vector<1x256xf32>
    %7 = vector.broadcast %6 : vector<1x256xf32> to vector<128x256xf32>
    %8 = arith.addf %5, %7 : vector<128x256xf32>
    %cst_6 = arith.constant 0.000000e+00 : f32
    %9 = vector.broadcast %cst_6 : f32 to vector<128x256xf32>
    %10 = arith.maximumf %8, %9 : vector<128x256xf32>
    %c0_7 = arith.constant 0 : index
    %c0_8 = arith.constant 0 : index
    %11 = vector.load %arg8[%c0_7, %c0_8] : memref<128x256xf32, #tpu.memory_space<vmem>>, vector<128x256xf32>
    %12 = arith.truncf %10 : vector<128x256xf32> to vector<128x256xbf16>
    %c0_9 = arith.constant 0 : index
    %c0_10 = arith.constant 0 : index
    %13 = vector.load %arg5[%c0_9, %c0_10] : memref<256x256xbf16, #tpu.memory_space<vmem>>, vector<256x256xbf16>
    %cst_11 = arith.constant dense<0.000000e+00> : vector<128x256xf32>
    %14 = tpu.matmul %12, %13, %cst_11 {dimension_numbers = #tpu.dot_dimension_numbers<[1], [0], [0], [1], [0, 0, 1, 1], [], []>} : vector<128x256xbf16>, vector<256x256xbf16>, vector<128x256xf32> -> vector<128x256xf32>
    %15 = arith.addf %11, %14 : vector<128x256xf32>
    %c0_12 = arith.constant 0 : index
    %c0_13 = arith.constant 0 : index
    %16 = vector.load %arg8[%c0_12, %c0_13] : memref<128x256xf32, #tpu.memory_space<vmem>>, vector<128x256xf32>
    tpu.vector_store %arg8[%c0_12, %c0_13], %15 {strides = array<i32>} : memref<128x256xf32, #tpu.memory_space<vmem>>, vector<128x256xf32>,
    %c0_i32_14 = arith.constant 0 : i32
    %17 = arith.cmpi eq, %arg1, %c0_i32_14 : i32
    %18 = arith.extui %17 : i1 to i32
    %c0_i32_15 = arith.constant 0 : i32
    %19 = arith.cmpi ne, %18, %c0_i32_15 : i32
    scf.if %19 {
      %c0_16 = arith.constant 0 : index
      %c0_17 = arith.constant 0 : index
      %20 = vector.load %arg8[%c0_16, %c0_17] : memref<128x256xf32, #tpu.memory_space<vmem>>, vector<128x256xf32>
      %c0_18 = arith.constant 0 : index
      %c0_19 = arith.constant 0 : index
      %21 = vector.load %arg6[%c0_18, %c0_19] : memref<1x256xf32, #tpu.memory_space<vmem>>, vector<1x256xf32>
      %22 = vector.broadcast %21 : vector<1x256xf32> to vector<128x256xf32>
      %23 = arith.addf %20, %22 : vector<128x256xf32>
      %c0_20 = arith.constant 0 : index
      %c0_21 = arith.constant 0 : index
      %24 = vector.load %arg7[%c0_20, %c0_21] : memref<128x256xf32, #tpu.memory_space<vmem>>, vector<128x256xf32>
      tpu.vector_store %arg7[%c0_20, %c0_21], %23 {strides = array<i32>} : memref<128x256xf32, #tpu.memory_space<vmem>>, vector<128x256xf32>,
    } else {
    }
    return
  }
  func.func @transform_0(%arg0: i32, %arg1: i32) -> (i32, i32) {
    %c0_i32 = arith.constant 0 : i32
    %c0_i32_0 = arith.constant 0 : i32
    return %arg0, %c0_i32 : i32, i32
  }
  func.func @transform_1(%arg0: i32, %arg1: i32) -> (i32, i32) {
    %c0_i32 = arith.constant 0 : i32
    %c0_i32_0 = arith.constant 0 : i32
    return %c0_i32, %arg1 : i32, i32
  }
  func.func @transform_2(%arg0: i32, %arg1: i32) -> (i32, i32) {
    %c0_i32 = arith.constant 0 : i32
    %c0_i32_0 = arith.constant 0 : i32
    return %c0_i32, %arg1 : i32, i32
  }
  func.func @transform_3(%arg0: i32, %arg1: i32) -> (i32, i32) {
    %c0_i32 = arith.constant 0 : i32
    %c0_i32_0 = arith.constant 0 : i32
    return %arg1, %c0_i32 : i32, i32
  }
  func.func @transform_4(%arg0: i32, %arg1: i32) -> (i32, i32) {
    %c0_i32 = arith.constant 0 : i32
    %c0_i32_0 = arith.constant 0 : i32
    %c0_i32_1 = arith.constant 0 : i32
    return %c0_i32, %c0_i32_0 : i32, i32
  }
  func.func @transform_5(%arg0: i32, %arg1: i32) -> (i32, i32) {
    %c0_i32 = arith.constant 0 : i32
    %c0_i32_0 = arith.constant 0 : i32
    return %arg0, %c0_i32 : i32, i32
  }
}

</mosaic_0001>

<bundles_post_ra>
// kernel: tpu_custom_call.1
= control target key start
LH: loop header
LB: loop body
LE: loop exit
PB: predicated region body
PF: predicated region fallthrough
CT: control target
= control target key end

     0   :  { %10 = vsyncpa [#allocation4], 0  ;;  %s1583_s0 = inlined_call_operand.hbm [shape: bf16[128,256], index: 0, kind: input, shape index: {}]   ;;  %s1584_s1 = inlined_call_operand.hbm [shape: bf16[256,256], index: 1, kind: input, shape index: {}]   ;;  %s1585_s2 = inlined_call_operand.vmem [shape: f32[1,256], index: 2, kind: input, shape index: {}]   ;;  %s1586_s3 = inlined_call_operand.hbm [shape: bf16[256,256], index: 3, kind: input, shape index: {}]   ;;  %s1587_s4 = inlined_call_operand.vmem [shape: f32[1,256], index: 4, kind: input, shape index: {}]   ;;  %s1588_s5 = inlined_call_operand.hbm [shape: f32[128,256], index: 5, kind: output, shape index: {}]  }
   0x1   :  { %11 = vsyncpa [#allocation7], 0 }
   0x2   :  { %12 = vsyncpa [#allocation5], 0  ;;  %s1391_s18 = smov [#allocation6]   ;;  %s1392_s20 = smov [#allocation3]  }
   0x3   :  { %s30_s19 = sshll.u32 %s1391_s18, 4  ;;  %s18_s21 = sshll.u32 %s1392_s20, 4  ;;  %s31_s19 = int_to_ptr.vmem [resolvable:$true] %s30_s19  ;;  %s1429_s21 = int_to_ptr.vmem [resolvable:$true] %s18_s21 }
   0x4   :  { %s1297_s24 = scalar_lea.hbm %s1584_s1, 4096 }
   0x5   :  { %p1298_p0 = scmp.ne.s32.totalorder %s1584_s1, %s1297_s24  ;;  %p1301_p1 = scmp.lt.u32.totalorder %s1297_s24, %s1584_s1 }
   0x7   :  { %p1303_p2 = pnand %p1301_p1, %p1298_p0 }
   0x9   :  { %1306 = shalt.err (!%p1303_p2)
}
   0xa   :  { %s1307_s29 = scalar_lea.vmem %s31_s19, 4096  ;;  %p1312_p4 = scmp.lt.s32.totalorder %s31_s19, %s31_s19 }
   0xb   :  { %p1308_p3 = scmp.ne.s32.totalorder %s31_s19, %s1307_s29  ;;  %p1313_p5 = scmp.lt.s32.totalorder %s1307_s29, %s1307_s29 }
   0xd   :  { %p1314_p6 = por %p1313_p5, %p1312_p4 }
   0xf   :  { %p1315_p7 = pnand %p1314_p6, %p1308_p3 }
  0x11   :  { %1318 = shalt.err (!%p1315_p7)
}
  0x12   :  { %s1393_s30 = smov 128   ;;  %s1394_s6 = smov 8  }
  0x13   :  { %36 = dma.hbm_to_vmem [thread:$0]  %s1584_s1, 4096, %s31_s19, [#allocation7], %s1393_s30, %s1393_s30, %s1394_s6  }
  0x14   :  { %s1319_s11 = scalar_lea.hbm %s1583_s0, 2048 }
  0x15   :  { %p1320_p8 = scmp.ne.s32.totalorder %s1583_s0, %s1319_s11  ;;  %p1323_p9 = scmp.lt.u32.totalorder %s1319_s11, %s1583_s0 }
  0x17   :  { %p1325_p10 = pnand %p1323_p9, %p1320_p8 }
  0x19   :  { %1328 = shalt.err (!%p1325_p10)
}
  0x1a   :  { %s1329_s16 = scalar_lea.vmem %s1429_s21, 2048  ;;  %p1334_p12 = scmp.lt.s32.totalorder %s1429_s21, %s1429_s21 }
  0x1b   :  { %p1330_p11 = scmp.ne.s32.totalorder %s1429_s21, %s1329_s16  ;;  %p1335_p13 = scmp.lt.s32.totalorder %s1329_s16, %s1329_s16 }
  0x1d   :  { %p1336_p0 = por %p1335_p13, %p1334_p12 }
  0x1f   :  { %p1337_p1 = pnand %p1336_p0, %p1330_p11 }
  0x21   :  { %1340 = shalt.err (!%p1337_p1)
}
  0x22   :  { %24 = dma.hbm_to_vmem [thread:$0]  %s1583_s0, 2048, %s1429_s21, [#allocation4], %s1393_s30, %s1393_s30, %s1394_s6  }
  0x23   :  { %s1395_s18 = smov [#allocation8]   ;;  %s1341_s23 = scalar_lea.hbm %s1586_s3, 4096 }
  0x24   :  { %s44_s19 = sshll.u32 %s1395_s18, 4  ;;  %p1342_p2 = scmp.ne.s32.totalorder %s1586_s3, %s1341_s23  ;;  %s45_s19 = int_to_ptr.vmem [resolvable:$true] %s44_s19 }
  0x25   :  { %p1345_p3 = scmp.lt.u32.totalorder %s1341_s23, %s1586_s3 }
  0x27   :  { %p1347_p4 = pnand %p1345_p3, %p1342_p2 }
  0x29   :  { %1350 = shalt.err (!%p1347_p4)
}
  0x2a   :  { %s1351_s28 = scalar_lea.vmem %s45_s19, 4096  ;;  %p1356_p6 = scmp.lt.s32.totalorder %s45_s19, %s45_s19 }
  0x2b   :  { %p1352_p5 = scmp.ne.s32.totalorder %s45_s19, %s1351_s28  ;;  %p1357_p7 = scmp.lt.s32.totalorder %s1351_s28, %s1351_s28 }
  0x2d   :  { %p1358_p8 = por %p1357_p7, %p1356_p6 }
  0x2f   :  { %p1359_p9 = pnand %p1358_p8, %p1352_p5 }
  0x31   :  { %1362 = shalt.err (!%p1359_p9)
}
  0x32   :  { %50 = dma.hbm_to_vmem [thread:$0]  %s1586_s3, 4096, %s45_s19, [#allocation7], %s1393_s30, %s1393_s30, %s1394_s6  }
  0x33   :  { %1385 = dma.done.wait [#allocation4], 2048  }
  0x34   :  { %1386 = vsyncadd [#allocation4], 4294965248 }
  0x35   :  { %1387 = dma.done.wait [#allocation7], 8192  }
  0x36   :  { %1388 = vsyncadd [#allocation7], 4294959104  ;;  %v1177_v0 = vld [vmem:[#allocation6 + $0x4] ss:$8 sps:$4 sm:$0xff]   ;;  %v1179_v1 = vld [vmem:[#allocation6] ss:$8 sps:$4 sm:$0xff]  }
  0x37   :  { %398 = vmatprep.subr.bf16.mxu0 %v1177_v0  ;;  %v1180_v2 = vld [vmem:[#allocation6 + $0x14] ss:$8 sps:$4 sm:$0xff]   ;;  %v1182_v3 = vld [vmem:[#allocation6 + $0x10] ss:$8 sps:$4 sm:$0xff]   ;;  %v1183_v4 = vld [vmem:[#allocation6 + $0x24] ss:$8 sps:$4 sm:$0xff]  }
  0x38   :  { %399 = vmatpush1.bf16.msra.mxu0 %v1179_v1  ;;  %v1185_v5 = vld [vmem:[#allocation6 + $0x20] ss:$8 sps:$4 sm:$0xff]   ;;  %v1186_v6 = vld [vmem:[#allocation6 + $0x34] ss:$8 sps:$4 sm:$0xff]   ;;  %v1188_v7 = vld [vmem:[#allocation6 + $0x30] ss:$8 sps:$4 sm:$0xff]  }
  0x39   :  { %400 = vmatprep.subr.bf16.mxu0 %v1180_v2  ;;  %v1189_v8 = vld [vmem:[#allocation6 + $0x44] ss:$8 sps:$4 sm:$0xff]   ;;  %v1191_v9 = vld [vmem:[#allocation6 + $0x40] ss:$8 sps:$4 sm:$0xff]   ;;  %v1192_v10 = vld [vmem:[#allocation6 + $0x54] ss:$8 sps:$4 sm:$0xff]  }
  0x3a   :  { %v1194_v11 = vld [vmem:[#allocation6 + $0x50] ss:$8 sps:$4 sm:$0xff]   ;;  %v1195_v12 = vld [vmem:[#allocation6 + $0x64] ss:$8 sps:$4 sm:$0xff]   ;;  %v1197_v14 = vld [vmem:[#allocation6 + $0x60] ss:$8 sps:$4 sm:$0xff]  }
  0x3b   :  { %v1227_v13 = vld [vmem:[#allocation3 + $0x4] ss:$8 sps:$4 sm:$0xff]   ;;  %v1198_v15 = vld [vmem:[#allocation6 + $0x74] ss:$8 sps:$4 sm:$0xff]   ;;  %v1200_v16 = vld [vmem:[#allocation6 + $0x70] ss:$8 sps:$4 sm:$0xff]  }
  0x3c   :  { %401 = vmatpush1.bf16.msra.mxu0 %v1182_v3  ;;  %430 = vmatprep.mubr.bf16.mxu0 %v1227_v13  ;;  %v1201_v17 = vld [vmem:[#allocation6 + $0x84] ss:$8 sps:$4 sm:$0xff]   ;;  %v1203_v18 = vld [vmem:[#allocation6 + $0x80] ss:$8 sps:$4 sm:$0xff]   ;;  %v1204_v19 = vld [vmem:[#allocation6 + $0x94] ss:$8 sps:$4 sm:$0xff]  }
  0x3d   :  { %402 = vmatprep.subr.bf16.mxu0 %v1183_v4  ;;  %v1249_v20 = vld [vmem:[#allocation8 + $0x4] ss:$8 sps:$4 sm:$0xff]   ;;  %v1251_v21 = vld [vmem:[#allocation8] ss:$8 sps:$4 sm:$0xff]   ;;  %v1206_v22 = vld [vmem:[#allocation6 + $0x90] ss:$8 sps:$4 sm:$0xff]  }
  0x3e   :  { %783 = vmatprep.subr.bf16.mxu1 %v1249_v20  ;;  %v1252_v23 = vld [vmem:[#allocation8 + $0x14] ss:$8 sps:$4 sm:$0xff]   ;;  %v1207_v24 = vld [vmem:[#allocation6 + $0xa4] ss:$8 sps:$4 sm:$0xff]   ;;  %v1254_v25 = vld [vmem:[#allocation8 + $0x10] ss:$8 sps:$4 sm:$0xff]  }
  0x3f   :  { %784 = vmatpush1.bf16.msra.mxu1 %v1251_v21  ;;  %v1255_v26 = vld [vmem:[#allocation8 + $0x24] ss:$8 sps:$4 sm:$0xff]   ;;  %v1209_v27 = vld [vmem:[#allocation6 + $0xa0] ss:$8 sps:$4 sm:$0xff]   ;;  %v1210_v28 = vld [vmem:[#allocation6 + $0xb4] ss:$8 sps:$4 sm:$0xff]  }
  0x40   :  { %403 = vmatpush1.bf16.msra.mxu0 %v1185_v5  ;;  %785 = vmatprep.subr.bf16.mxu1 %v1252_v23  ;;  %v1257_v29 = vld [vmem:[#allocation8 + $0x20] ss:$8 sps:$4 sm:$0xff]   ;;  %v1258_v30 = vld [vmem:[#allocation8 + $0x34] ss:$8 sps:$4 sm:$0xff]   ;;  %v1212_v31 = vld [vmem:[#allocation6 + $0xb0] ss:$8 sps:$4 sm:$0xff]  }
  0x41   :  { %404 = vmatprep.subr.bf16.mxu0 %v1186_v6  ;;  %v1213_v32 = vld [vmem:[#allocation6 + $0xc4] ss:$8 sps:$4 sm:$0xff]   ;;  %v1260_v33 = vld [vmem:[#allocation8 + $0x30] ss:$8 sps:$4 sm:$0xff]   ;;  %v1215_v35 = vld [vmem:[#allocation6 + $0xc0] ss:$8 sps:$4 sm:$0xff]  }
  0x42   :  { %v1261_v34 = vld [vmem:[#allocation8 + $0x44] ss:$8 sps:$4 sm:$0xff]   ;;  %v1216_v36 = vld [vmem:[#allocation6 + $0xd4] ss:$8 sps:$4 sm:$0xff]   ;;  %v1263_v37 = vld [vmem:[#allocation8 + $0x40] ss:$8 sps:$4 sm:$0xff]  }
  0x43   :  { %786 = vmatpush1.bf16.msra.mxu1 %v1254_v25  ;;  %v1264_v38 = vld [vmem:[#allocation8 + $0x54] ss:$8 sps:$4 sm:$0xff]   ;;  %v1218_v39 = vld [vmem:[#allocation6 + $0xd0] ss:$8 sps:$4 sm:$0xff]   ;;  %v1219_v41 = vld [vmem:[#allocation6 + $0xe4] ss:$8 sps:$4 sm:$0xff]  }
  0x44   :  { %405 = vmatpush1.bf16.msra.mxu0 %v1188_v7  ;;  %787 = vmatprep.subr.bf16.mxu1 %v1255_v26  ;;  %v1266_v40 = vld [vmem:[#allocation8 + $0x50] ss:$8 sps:$4 sm:$0xff]   ;;  %v1267_v42 = vld [vmem:[#allocation8 + $0x64] ss:$8 sps:$4 sm:$0xff]   ;;  %v1221_v43 = vld [vmem:[#allocation6 + $0xe0] ss:$8 sps:$4 sm:$0xff]  }
  0x45   :  { %406 = vmatprep.subr.bf16.mxu0 %v1189_v8  ;;  %v1269_v44 = vld [vmem:[#allocation8 + $0x60] ss:$8 sps:$4 sm:$0xff]   ;;  %v1222_v45 = vld [vmem:[#allocation6 + $0xf4] ss:$8 sps:$4 sm:$0xff]   ;;  %v1224_v47 = vld [vmem:[#allocation6 + $0xf0] ss:$8 sps:$4 sm:$0xff]  }
  0x46   :  { %v1270_v46 = vld [vmem:[#allocation8 + $0x74] ss:$8 sps:$4 sm:$0xff]   ;;  %v1272_v48 = vld [vmem:[#allocation8 + $0x70] ss:$8 sps:$4 sm:$0xff]   ;;  %v1273_v49 = vld [vmem:[#allocation8 + $0x84] ss:$8 sps:$4 sm:$0xff]  }
  0x47   :  { %788 = vmatpush1.bf16.msra.mxu1 %v1257_v29  ;;  %v1225_v50 = vld [vmem:[#allocation3] ss:$8 sps:$4 sm:$0xff]   ;;  %v1228_v51 = vld [vmem:[#allocation3 + $0x14] ss:$8 sps:$4 sm:$0xff]   ;;  %v1278_v54 = vld [vmem:[#allocation8 + $0x90] ss:$8 sps:$4 sm:$0xff]  }
  0x48   :  { %407 = vmatpush1.bf16.msra.mxu0 %v1191_v9  ;;  %789 = vmatprep.subr.bf16.mxu1 %v1258_v30  ;;  %v1275_v52 = vld [vmem:[#allocation8 + $0x80] ss:$8 sps:$4 sm:$0xff]   ;;  %v1276_v53 = vld [vmem:[#allocation8 + $0x94] ss:$8 sps:$4 sm:$0xff]   ;;  %v1279_v55 = vld [vmem:[#allocation8 + $0xa4] ss:$8 sps:$4 sm:$0xff]  }
  0x49   :  { %408 = vmatprep.subr.bf16.mxu0 %v1192_v10  ;;  %v1230_v56 = vld [vmem:[#allocation3 + $0x10] ss:$8 sps:$4 sm:$0xff]   ;;  %v1231_v57 = vld [vmem:[#allocation3 + $0x24] ss:$8 sps:$4 sm:$0xff]   ;;  %v1281_v58 = vld [vmem:[#allocation8 + $0xa0] ss:$8 sps:$4 sm:$0xff]  }
  0x4a   :  { %v1282_v59 = vld [vmem:[#allocation8 + $0xb4] ss:$8 sps:$4 sm:$0xff]   ;;  %v1284_v60 = vld [vmem:[#allocation8 + $0xb0] ss:$8 sps:$4 sm:$0xff]   ;;  %v1285_v61 = vld [vmem:[#allocation8 + $0xc4] ss:$8 sps:$4 sm:$0xff]  }
  0x4b   :  { %790 = vmatpush1.bf16.msra.mxu1 %v1260_v33  ;;  %v1233_v62 = vld [vmem:[#allocation3 + $0x20] ss:$8 sps:$4 sm:$0xff]   ;;  %v1234_v63 = vld [vmem:[#allocation3 + $0x34] ss:$8 sps:$4 sm:$0xff]   ;;  %v1236_v2 = vld [vmem:[#allocation3 + $0x30] ss:$8 sps:$4 sm:$0xff]  }
  0x4c   :  { %409 = vmatpush1.bf16.msra.mxu0 %v1194_v11  ;;  %791 = vmatprep.subr.bf16.mxu1 %v1261_v34  ;;  %v1287_v0 = vld [vmem:[#allocation8 + $0xc0] ss:$8 sps:$4 sm:$0xff]   ;;  %v1288_v1 = vld [vmem:[#allocation8 + $0xd4] ss:$8 sps:$4 sm:$0xff]   ;;  %v1237_v3 = vld [vmem:[#allocation3 + $0x44] ss:$8 sps:$4 sm:$0xff]  }
  0x4d   :  { %410 = vmatprep.subr.bf16.mxu0 %v1195_v12  ;;  %v1239_v4 = vld [vmem:[#allocation3 + $0x40] ss:$8 sps:$4 sm:$0xff]   ;;  %v1240_v5 = vld [vmem:[#allocation3 + $0x54] ss:$8 sps:$4 sm:$0xff]   ;;  %v1242_v6 = vld [vmem:[#allocation3 + $0x50] ss:$8 sps:$4 sm:$0xff]  }
  0x4e   :  { %v1243_v7 = vld [vmem:[#allocation3 + $0x64] ss:$8 sps:$4 sm:$0xff]   ;;  %v1245_v8 = vld [vmem:[#allocation3 + $0x60] ss:$8 sps:$4 sm:$0xff]   ;;  %v1246_v9 = vld [vmem:[#allocation3 + $0x74] ss:$8 sps:$4 sm:$0xff]  }
  0x4f   :  { %792 = vmatpush1.bf16.msra.mxu1 %v1263_v37  ;;  %v1248_v10 = vld [vmem:[#allocation3 + $0x70] ss:$8 sps:$4 sm:$0xff]   ;;  %v1291_v12 = vld [vmem:[#allocation8 + $0xe4] ss:$8 sps:$4 sm:$0xff]   ;;  %v1293_v13 = vld [vmem:[#allocation8 + $0xe0] ss:$8 sps:$4 sm:$0xff]  }
  0x50   :  { %411 = vmatpush1.bf16.msra.mxu0 %v1197_v14  ;;  %793 = vmatprep.subr.bf16.mxu1 %v1264_v38  ;;  %v1290_v11 = vld [vmem:[#allocation8 + $0xd0] ss:$8 sps:$4 sm:$0xff]   ;;  %v1294_v14 = vld [vmem:[#allocation8 + $0xf4] ss:$8 sps:$4 sm:$0xff]  }
  0x51   :  { %412 = vmatprep.subr.bf16.mxu0 %v1198_v15  ;;  %v1296_v15 = vld [vmem:[#allocation8 + $0xf0] ss:$8 sps:$4 sm:$0xff]  }
  0x53   :  { %794 = vmatpush1.bf16.msra.mxu1 %v1266_v40 }
  0x54   :  { %413 = vmatpush1.bf16.msra.mxu0 %v1200_v16  ;;  %795 = vmatprep.subr.bf16.mxu1 %v1267_v42  ;;  %v148_v16 = vlaneseq }
  0x55   :  { %414 = vmatprep.subr.bf16.mxu0 %v1201_v17 }
  0x56   :  { %v1481_v17 = vshrl.u32 %v148_v16, 7 }
  0x57   :  { %796 = vmatpush1.bf16.msra.mxu1 %v1269_v44 }
  0x58   :  { %415 = vmatpush1.bf16.msra.mxu0 %v1203_v18  ;;  %797 = vmatprep.subr.bf16.mxu1 %v1270_v46  ;;  %v150_v18 = vsub.s32 0, %v1481_v17  ;;  %v154_v20 = vsub.s32 1, %v1481_v17 }
  0x59   :  { %416 = vmatprep.subr.bf16.mxu0 %v1204_v19  ;;  %v146_v19 = vld [vmem:[%s1585_s2] sm:$0x3] }
  0x5a   :  { %v1490_v21 = vrot.slane %v146_v19, %v150_v18 }
  0x5b   :  { %798 = vmatpush1.bf16.msra.mxu1 %v1272_v48 }
  0x5c   :  { %417 = vmatpush1.bf16.msra.mxu0 %v1206_v22  ;;  %799 = vmatprep.subr.bf16.mxu1 %v1273_v49  ;;  %v1494_v22 = vrot.slane %v146_v19, %v154_v20 }
  0x5d   :  { %418 = vmatprep.subr.bf16.mxu0 %v1207_v24 }
  0x5f   :  { %800 = vmatpush1.bf16.msra.mxu1 %v1275_v52 }
  0x60   :  { %419 = vmatpush1.bf16.msra.mxu0 %v1209_v27  ;;  %801 = vmatprep.subr.bf16.mxu1 %v1276_v53 }
  0x61   :  { %420 = vmatprep.subr.bf16.mxu0 %v1210_v28 }
  0x63   :  { %802 = vmatpush1.bf16.msra.mxu1 %v1278_v54 }
  0x64   :  { %421 = vmatpush1.bf16.msra.mxu0 %v1212_v31  ;;  %803 = vmatprep.subr.bf16.mxu1 %v1279_v55 }
  0x65   :  { %422 = vmatprep.subr.bf16.mxu0 %v1213_v32 }
  0x67   :  { %804 = vmatpush1.bf16.msra.mxu1 %v1281_v58 }
  0x68   :  { %423 = vmatpush1.bf16.msra.mxu0 %v1215_v35  ;;  %805 = vmatprep.subr.bf16.mxu1 %v1282_v59 }
  0x69   :  { %424 = vmatprep.subr.bf16.mxu0 %v1216_v36 }
  0x6b   :  { %806 = vmatpush1.bf16.msra.mxu1 %v1284_v60 }
  0x6c   :  { %425 = vmatpush1.bf16.msra.mxu0 %v1218_v39  ;;  %807 = vmatprep.subr.bf16.mxu1 %v1285_v61 }
  0x6d   :  { %426 = vmatprep.subr.bf16.mxu0 %v1219_v41 }
  0x6f   :  { %808 = vmatpush1.bf16.msra.mxu1 %v1287_v0 }
  0x70   :  { %427 = vmatpush1.bf16.msra.mxu0 %v1221_v43  ;;  %809 = vmatprep.subr.bf16.mxu1 %v1288_v1 }
  0x71   :  { %428 = vmatprep.subr.bf16.mxu0 %v1222_v45 }
  0x73   :  { %810 = vmatpush1.bf16.msra.mxu1 %v1290_v11 }
  0x74   :  { %429 = vmatpush1.bf16.msra.mxu0 %v1224_v47  ;;  %811 = vmatprep.subr.bf16.mxu1 %v1291_v12 }
  0x77   :  { %431 = vmatmul.mubr.bf16.vlgmr.msra.gmra.mrb[0].mxu0 %v1225_v50  ;;  %812 = vmatpush1.bf16.msra.mxu1 %v1293_v13 }
  0x78   :  { %440 = vmatprep.mubr.bf16.mxu0 %v1228_v51  ;;  %813 = vmatprep.subr.bf16.mxu1 %v1294_v14 }
  0x7b   :  { %814 = vmatpush1.bf16.msra.mxu1 %v1296_v15 }
  0x7f   :  { %441 = vmatmul.mubr.bf16.gmra.mrb[4].mxu0 %v1230_v56 }
  0x80   :  { %450 = vmatprep.mubr.bf16.mxu0 %v1231_v57 }
  0x87   :  { %451 = vmatmul.mubr.bf16.gmra.mrb[8].mxu0 %v1233_v62 }
  0x88   :  { %460 = vmatprep.mubr.bf16.mxu0 %v1234_v63 }
  0x8f   :  { %461 = vmatmul.mubr.bf16.gmra.mrb[12].mxu0 %v1236_v2 }
  0x90   :  { %470 = vmatprep.mubr.bf16.mxu0 %v1237_v3 }
  0x97   :  { %471 = vmatmul.mubr.bf16.gmra.mrb[16].mxu0 %v1239_v4 }
  0x98   :  { %480 = vmatprep.mubr.bf16.mxu0 %v1240_v5 }
  0x9f   :  { %481 = vmatmul.mubr.bf16.gmra.mrb[20].mxu0 %v1242_v6 }
  0xa0   :  { %490 = vmatprep.mubr.bf16.mxu0 %v1243_v7 }
  0xa7   :  { %491 = vmatmul.mubr.bf16.gmra.mrb[24].mxu0 %v1245_v8 }
  0xa8   :  { %500 = vmatprep.mubr.bf16.mxu0 %v1246_v9 }
  0xaf   :  { %501 = vmatmul.mubr.bf16.gmra.mrb[28].mxu0 %v1248_v10 }
 0x14a   :  { %v432_v23 = vpop.f32.mrb[0].mxu0 }
 0x14b   :  { %v433_v24 = vadd.f32 %v432_v23, %v1490_v21  ;;  %v434_v25 = vpop.f32.mrb[1].mxu0 }
 0x14c   :  { %v435_v26 = vadd.f32 %v434_v25, %v1494_v22  ;;  %v436_v27 = vpop.f32.mrb[2].mxu0 }
 0x14d   :  { %v437_v28 = vadd.f32 %v436_v27, %v1490_v21  ;;  %v438_v29 = vpop.f32.mrb[3].mxu0  ;;  %v511_v31 = vmax.f32 %v433_v24, 0.0 }
 0x14e   :  { %v439_v30 = vadd.f32 %v438_v29, %v1494_v22  ;;  %v512_v33 = vmax.f32 %v435_v26, 0.0 }
 0x14f   :  { %v513_v32 = vmax.f32 %v437_v28, 0.0 }
 0x150   :  { %v514_v34 = vmax.f32 %v439_v30, 0.0 }
 0x151   :  { %v575_v35 = vpack.c.bf16 %v513_v32, %v511_v31 }
 0x152   :  { %v442_v36 = vpop.f32.mrb[4].mxu0  ;;  %v576_v37 = vpack.c.bf16 %v514_v34, %v512_v33 }
 0x153   :  { %v443_v38 = vadd.f32 %v442_v36, %v1490_v21  ;;  %v444_v39 = vpop.f32.mrb[5].mxu0 }
 0x154   :  { %v445_v40 = vadd.f32 %v444_v39, %v1494_v22  ;;  %v446_v41 = vpop.f32.mrb[6].mxu0  ;;  %815 = vmatprep.mubr.bf16.mxu1 %v576_v37 }
 0x155   :  { %v447_v42 = vadd.f32 %v446_v41, %v1490_v21  ;;  %v448_v43 = vpop.f32.mrb[7].mxu0  ;;  %816 = vmatmul.mubr.bf16.vlgmr.msra.gmra.mrb[0].mxu1 %v575_v35  ;;  %v515_v45 = vmax.f32 %v443_v38, 0.0 }
 0x156   :  { %v449_v44 = vadd.f32 %v448_v43, %v1494_v22  ;;  %v516_v47 = vmax.f32 %v445_v40, 0.0 }
 0x157   :  { %v517_v46 = vmax.f32 %v447_v42, 0.0 }
 0x158   :  { %v518_v48 = vmax.f32 %v449_v44, 0.0 }
 0x159   :  { %v577_v49 = vpack.c.bf16 %v517_v46, %v515_v45 }
 0x15a   :  { %v578_v50 = vpack.c.bf16 %v518_v48, %v516_v47  ;;  %v452_v51 = vpop.f32.mrb[8].mxu0 }
 0x15b   :  { %v453_v52 = vadd.f32 %v452_v51, %v1490_v21  ;;  %v454_v53 = vpop.f32.mrb[9].mxu0 }
 0x15c   :  { %v455_v54 = vadd.f32 %v454_v53, %v1494_v22  ;;  %v456_v55 = vpop.f32.mrb[10].mxu0  ;;  %825 = vmatprep.mubr.bf16.mxu1 %v578_v50 }
 0x15d   :  { %v457_v56 = vadd.f32 %v456_v55, %v1490_v21  ;;  %v458_v57 = vpop.f32.mrb[11].mxu0  ;;  %826 = vmatmul.mubr.bf16.gmra.mrb[4].mxu1 %v577_v49  ;;  %v519_v59 = vmax.f32 %v453_v52, 0.0 }
 0x15e   :  { %v459_v58 = vadd.f32 %v458_v57, %v1494_v22  ;;  %v520_v61 = vmax.f32 %v455_v54, 0.0 }
 0x15f   :  { %v521_v60 = vmax.f32 %v457_v56, 0.0 }
 0x160   :  { %v522_v62 = vmax.f32 %v459_v58, 0.0 }
 0x161   :  { %v579_v63 = vpack.c.bf16 %v521_v60, %v519_v59 }
 0x162   :  { %v580_v0 = vpack.c.bf16 %v522_v62, %v520_v61  ;;  %v462_v1 = vpop.f32.mrb[12].mxu0 }
 0x163   :  { %v463_v2 = vadd.f32 %v462_v1, %v1490_v21  ;;  %v464_v3 = vpop.f32.mrb[13].mxu0 }
 0x164   :  { %v465_v4 = vadd.f32 %v464_v3, %v1494_v22  ;;  %v466_v5 = vpop.f32.mrb[14].mxu0  ;;  %835 = vmatprep.mubr.bf16.mxu1 %v580_v0 }
 0x165   :  { %v467_v6 = vadd.f32 %v466_v5, %v1490_v21  ;;  %v468_v7 = vpop.f32.mrb[15].mxu0  ;;  %836 = vmatmul.mubr.bf16.gmra.mrb[8].mxu1 %v579_v63  ;;  %v523_v9 = vmax.f32 %v463_v2, 0.0 }
 0x166   :  { %v469_v8 = vadd.f32 %v468_v7, %v1494_v22  ;;  %v524_v11 = vmax.f32 %v465_v4, 0.0 }
 0x167   :  { %v525_v10 = vmax.f32 %v467_v6, 0.0 }
 0x168   :  { %v526_v12 = vmax.f32 %v469_v8, 0.0 }
 0x169   :  { %v581_v13 = vpack.c.bf16 %v525_v10, %v523_v9 }
 0x16a   :  { %v582_v14 = vpack.c.bf16 %v526_v12, %v524_v11  ;;  %v472_v15 = vpop.f32.mrb[16].mxu0  ;;  %v995_v12 = vld [vmem:[%s1587_s4] sm:$0x3]  ;;  %s1396_s4 = smov [#allocation9]  }
 0x16b   :  { %v473_v16 = vadd.f32 %v472_v15, %v1490_v21  ;;  %v474_v19 = vpop.f32.mrb[17].mxu0  ;;  %s1076_s6 = sshll.u32 %s1396_s4, 4  ;;  %s1077_s6 = int_to_ptr.vmem [resolvable:$true] %s1076_s6 }
 0x16c   :  { %v475_v23 = vadd.f32 %v474_v19, %v1494_v22  ;;  %v476_v24 = vpop.f32.mrb[18].mxu0  ;;  %845 = vmatprep.mubr.bf16.mxu1 %v582_v14  ;;  %s1363_s7 = scalar_lea.vmem %s1077_s6, 4096  ;;  %p1368_p11 = scmp.lt.s32.totalorder %s1077_s6, %s1077_s6 }
 0x16d   :  { %v477_v25 = vadd.f32 %v476_v24, %v1490_v21  ;;  %v478_v26 = vpop.f32.mrb[19].mxu0  ;;  %846 = vmatmul.mubr.bf16.gmra.mrb[12].mxu1 %v581_v13  ;;  %v527_v28 = vmax.f32 %v473_v16, 0.0  ;;  %v1533_v13 = vrot.slane %v995_v12, %v150_v18  ;;  %p1364_p10 = scmp.ne.s32.totalorder %s1077_s6, %s1363_s7  ;;  %p1369_p12 = scmp.lt.s32.totalorder %s1363_s7, %s1363_s7 }
 0x16e   :  { %v479_v27 = vadd.f32 %v478_v26, %v1494_v22  ;;  %v528_v30 = vmax.f32 %v475_v23, 0.0 }
 0x16f   :  { %v529_v29 = vmax.f32 %v477_v25, 0.0  ;;  %p1370_p13 = por %p1369_p12, %p1368_p11 }
 0x170   :  { %v530_v31 = vmax.f32 %v479_v27, 0.0 }
 0x171   :  { %v583_v32 = vpack.c.bf16 %v529_v29, %v527_v28  ;;  %p1371_p0 = pnand %p1370_p13, %p1364_p10 }
 0x172   :  { %v584_v33 = vpack.c.bf16 %v530_v31, %v528_v30  ;;  %v482_v34 = vpop.f32.mrb[20].mxu0 }
 0x173   :  { %v483_v35 = vadd.f32 %v482_v34, %v1490_v21  ;;  %v484_v36 = vpop.f32.mrb[21].mxu0 }
 0x174   :  { %v485_v37 = vadd.f32 %v484_v36, %v1494_v22  ;;  %v486_v38 = vpop.f32.mrb[22].mxu0  ;;  %855 = vmatprep.mubr.bf16.mxu1 %v584_v33 }
 0x175   :  { %v487_v39 = vadd.f32 %v486_v38, %v1490_v21  ;;  %v488_v40 = vpop.f32.mrb[23].mxu0  ;;  %856 = vmatmul.mubr.bf16.gmra.mrb[16].mxu1 %v583_v32  ;;  %v531_v42 = vmax.f32 %v483_v35, 0.0 }
 0x176   :  { %v489_v41 = vadd.f32 %v488_v40, %v1494_v22  ;;  %v532_v44 = vmax.f32 %v485_v37, 0.0 }
 0x177   :  { %v533_v43 = vmax.f32 %v487_v39, 0.0 }
 0x178   :  { %v534_v45 = vmax.f32 %v489_v41, 0.0 }
 0x179   :  { %v585_v46 = vpack.c.bf16 %v533_v43, %v531_v42 }
 0x17a   :  { %v586_v47 = vpack.c.bf16 %v534_v45, %v532_v44  ;;  %v492_v48 = vpop.f32.mrb[24].mxu0 }
 0x17b   :  { %v493_v49 = vadd.f32 %v492_v48, %v1490_v21  ;;  %v494_v50 = vpop.f32.mrb[25].mxu0 }
 0x17c   :  { %v495_v51 = vadd.f32 %v494_v50, %v1494_v22  ;;  %v496_v52 = vpop.f32.mrb[26].mxu0  ;;  %865 = vmatprep.mubr.bf16.mxu1 %v586_v47 }
 0x17d   :  { %v497_v53 = vadd.f32 %v496_v52, %v1490_v21  ;;  %v498_v54 = vpop.f32.mrb[27].mxu0  ;;  %866 = vmatmul.mubr.bf16.gmra.mrb[20].mxu1 %v585_v46  ;;  %v535_v56 = vmax.f32 %v493_v49, 0.0 }
 0x17e   :  { %v499_v55 = vadd.f32 %v498_v54, %v1494_v22  ;;  %v536_v58 = vmax.f32 %v495_v51, 0.0 }
 0x17f   :  { %v537_v57 = vmax.f32 %v497_v53, 0.0 }
 0x180   :  { %v538_v59 = vmax.f32 %v499_v55, 0.0 }
 0x181   :  { %v587_v60 = vpack.c.bf16 %v537_v57, %v535_v56 }
 0x182   :  { %v588_v61 = vpack.c.bf16 %v538_v59, %v536_v58  ;;  %v502_v62 = vpop.f32.mrb[28].mxu0 }
 0x183   :  { %v503_v63 = vadd.f32 %v502_v62, %v1490_v21  ;;  %v504_v0 = vpop.f32.mrb[29].mxu0 }
 0x184   :  { %v505_v1 = vadd.f32 %v504_v0, %v1494_v22  ;;  %v506_v2 = vpop.f32.mrb[30].mxu0  ;;  %875 = vmatprep.mubr.bf16.mxu1 %v588_v61 }
 0x185   :  { %v507_v3 = vadd.f32 %v506_v2, %v1490_v21  ;;  %v508_v4 = vpop.f32.mrb[31].mxu0  ;;  %876 = vmatmul.mubr.bf16.gmra.mrb[24].mxu1 %v587_v60  ;;  %v539_v6 = vmax.f32 %v503_v63, 0.0  ;;  %v1537_v21 = vrot.slane %v995_v12, %v154_v20 }
 0x186   :  { %v509_v5 = vadd.f32 %v508_v4, %v1494_v22  ;;  %v540_v8 = vmax.f32 %v505_v1, 0.0 }
 0x187   :  { %v541_v7 = vmax.f32 %v507_v3, 0.0 }
 0x188   :  { %v542_v9 = vmax.f32 %v509_v5, 0.0 }
 0x189   :  { %v589_v10 = vpack.c.bf16 %v541_v7, %v539_v6 }
 0x18a   :  { %v590_v11 = vpack.c.bf16 %v542_v9, %v540_v8 }
 0x18c   :  { %885 = vmatprep.mubr.bf16.mxu1 %v590_v11 }
 0x18d   :  { %886 = vmatmul.mubr.bf16.gmra.mrb[28].mxu1 %v589_v10 }
 0x228   :  { %v817_v22 = vpop.f32.mrb[0].mxu1 }
 0x229   :  { %v1007_v14 = vadd.f32 %v1533_v13, %v817_v22  ;;  %v819_v15 = vpop.f32.mrb[1].mxu1 }
 0x22a   :  { %v1008_v16 = vadd.f32 %v1537_v21, %v819_v15  ;;  %v821_v19 = vpop.f32.mrb[2].mxu1 }
 0x22b   :  { %1039 = vst [vmem:[#allocation9] sm:$0xff] %v1007_v14  ;;  %v1009_v23 = vadd.f32 %v1533_v13, %v821_v19  ;;  %v823_v24 = vpop.f32.mrb[3].mxu1 }
 0x22c   :  { %1040 = vst [vmem:[#allocation9 + $0x8] sm:$0xff] %v1008_v16  ;;  %v1010_v25 = vadd.f32 %v1537_v21, %v823_v24 }
 0x22d   :  { %1041 = vst [vmem:[#allocation9 + $0x10] sm:$0xff] %v1009_v23 }
 0x22e   :  { %1042 = vst [vmem:[#allocation9 + $0x18] sm:$0xff] %v1010_v25 }
 0x230   :  { %v827_v18 = vpop.f32.mrb[4].mxu1 }
 0x231   :  { %v1011_v17 = vadd.f32 %v1533_v13, %v827_v18  ;;  %v829_v20 = vpop.f32.mrb[5].mxu1 }
 0x232   :  { %v1012_v26 = vadd.f32 %v1537_v21, %v829_v20  ;;  %v831_v27 = vpop.f32.mrb[6].mxu1 }
 0x233   :  { %1043 = vst [vmem:[#allocation9 + $0x20] sm:$0xff] %v1011_v17  ;;  %v1013_v28 = vadd.f32 %v1533_v13, %v831_v27  ;;  %v833_v29 = vpop.f32.mrb[7].mxu1 }
 0x234   :  { %1044 = vst [vmem:[#allocation9 + $0x28] sm:$0xff] %v1012_v26  ;;  %v1014_v30 = vadd.f32 %v1537_v21, %v833_v29 }
 0x235   :  { %1045 = vst [vmem:[#allocation9 + $0x30] sm:$0xff] %v1013_v28 }
 0x236   :  { %1046 = vst [vmem:[#allocation9 + $0x38] sm:$0xff] %v1014_v30 }
 0x238   :  { %v837_v31 = vpop.f32.mrb[8].mxu1 }
 0x239   :  { %v1015_v32 = vadd.f32 %v1533_v13, %v837_v31  ;;  %v839_v33 = vpop.f32.mrb[9].mxu1 }
 0x23a   :  { %v1016_v34 = vadd.f32 %v1537_v21, %v839_v33  ;;  %v841_v35 = vpop.f32.mrb[10].mxu1 }
 0x23b   :  { %1047 = vst [vmem:[#allocation9 + $0x40] sm:$0xff] %v1015_v32  ;;  %v1017_v36 = vadd.f32 %v1533_v13, %v841_v35  ;;  %v843_v37 = vpop.f32.mrb[11].mxu1 }
 0x23c   :  { %1048 = vst [vmem:[#allocation9 + $0x48] sm:$0xff] %v1016_v34  ;;  %v1018_v38 = vadd.f32 %v1537_v21, %v843_v37 }
 0x23d   :  { %1049 = vst [vmem:[#allocation9 + $0x50] sm:$0xff] %v1017_v36 }
 0x23e   :  { %1050 = vst [vmem:[#allocation9 + $0x58] sm:$0xff] %v1018_v38 }
 0x240   :  { %v847_v39 = vpop.f32.mrb[12].mxu1 }
 0x241   :  { %v1019_v40 = vadd.f32 %v1533_v13, %v847_v39  ;;  %v849_v41 = vpop.f32.mrb[13].mxu1 }
 0x242   :  { %v1020_v42 = vadd.f32 %v1537_v21, %v849_v41  ;;  %v851_v43 = vpop.f32.mrb[14].mxu1 }
 0x243   :  { %1051 = vst [vmem:[#allocation9 + $0x60] sm:$0xff] %v1019_v40  ;;  %v1021_v44 = vadd.f32 %v1533_v13, %v851_v43  ;;  %v853_v45 = vpop.f32.mrb[15].mxu1 }
 0x244   :  { %1052 = vst [vmem:[#allocation9 + $0x68] sm:$0xff] %v1020_v42  ;;  %v1022_v46 = vadd.f32 %v1537_v21, %v853_v45 }
 0x245   :  { %1053 = vst [vmem:[#allocation9 + $0x70] sm:$0xff] %v1021_v44 }
 0x246   :  { %1054 = vst [vmem:[#allocation9 + $0x78] sm:$0xff] %v1022_v46 }
 0x248   :  { %v857_v47 = vpop.f32.mrb[16].mxu1 }
 0x249   :  { %v1023_v48 = vadd.f32 %v1533_v13, %v857_v47  ;;  %v859_v49 = vpop.f32.mrb[17].mxu1 }
 0x24a   :  { %v1024_v50 = vadd.f32 %v1537_v21, %v859_v49  ;;  %v861_v51 = vpop.f32.mrb[18].mxu1 }
 0x24b   :  { %1055 = vst [vmem:[#allocation9 + $0x80] sm:$0xff] %v1023_v48  ;;  %v1025_v52 = vadd.f32 %v1533_v13, %v861_v51  ;;  %v863_v53 = vpop.f32.mrb[19].mxu1 }
 0x24c   :  { %1056 = vst [vmem:[#allocation9 + $0x88] sm:$0xff] %v1024_v50  ;;  %v1026_v54 = vadd.f32 %v1537_v21, %v863_v53 }
 0x24d   :  { %1057 = vst [vmem:[#allocation9 + $0x90] sm:$0xff] %v1025_v52 }
 0x24e   :  { %1058 = vst [vmem:[#allocation9 + $0x98] sm:$0xff] %v1026_v54 }
 0x250   :  { %v867_v55 = vpop.f32.mrb[20].mxu1 }
 0x251   :  { %v1027_v56 = vadd.f32 %v1533_v13, %v867_v55  ;;  %v869_v57 = vpop.f32.mrb[21].mxu1 }
 0x252   :  { %v1028_v58 = vadd.f32 %v1537_v21, %v869_v57  ;;  %v871_v59 = vpop.f32.mrb[22].mxu1 }
 0x253   :  { %1059 = vst [vmem:[#allocation9 + $0xa0] sm:$0xff] %v1027_v56  ;;  %v1029_v60 = vadd.f32 %v1533_v13, %v871_v59  ;;  %v873_v61 = vpop.f32.mrb[23].mxu1 }
 0x254   :  { %1060 = vst [vmem:[#allocation9 + $0xa8] sm:$0xff] %v1028_v58  ;;  %v1030_v62 = vadd.f32 %v1537_v21, %v873_v61 }
 0x255   :  { %1061 = vst [vmem:[#allocation9 + $0xb0] sm:$0xff] %v1029_v60 }
 0x256   :  { %1062 = vst [vmem:[#allocation9 + $0xb8] sm:$0xff] %v1030_v62 }
 0x258   :  { %v877_v63 = vpop.f32.mrb[24].mxu1 }
 0x259   :  { %v1031_v0 = vadd.f32 %v1533_v13, %v877_v63  ;;  %v879_v1 = vpop.f32.mrb[25].mxu1 }
 0x25a   :  { %v1032_v2 = vadd.f32 %v1537_v21, %v879_v1  ;;  %v881_v3 = vpop.f32.mrb[26].mxu1 }
 0x25b   :  { %1063 = vst [vmem:[#allocation9 + $0xc0] sm:$0xff] %v1031_v0  ;;  %v1033_v4 = vadd.f32 %v1533_v13, %v881_v3  ;;  %v883_v5 = vpop.f32.mrb[27].mxu1 }
 0x25c   :  { %1064 = vst [vmem:[#allocation9 + $0xc8] sm:$0xff] %v1032_v2  ;;  %v1034_v6 = vadd.f32 %v1537_v21, %v883_v5 }
 0x25d   :  { %1065 = vst [vmem:[#allocation9 + $0xd0] sm:$0xff] %v1033_v4 }
 0x25e   :  { %1066 = vst [vmem:[#allocation9 + $0xd8] sm:$0xff] %v1034_v6 }
 0x260   :  { %v887_v7 = vpop.f32.mrb[28].mxu1 }
 0x261   :  { %v1035_v8 = vadd.f32 %v1533_v13, %v887_v7  ;;  %v889_v9 = vpop.f32.mrb[29].mxu1 }
 0x262   :  { %v1036_v10 = vadd.f32 %v1537_v21, %v889_v9  ;;  %v891_v11 = vpop.f32.mrb[30].mxu1 }
 0x263   :  { %1067 = vst [vmem:[#allocation9 + $0xe0] sm:$0xff] %v1035_v8  ;;  %v1037_v12 = vadd.f32 %v1533_v13, %v891_v11  ;;  %v893_v22 = vpop.f32.mrb[31].mxu1 }
 0x264   :  { %1068 = vst [vmem:[#allocation9 + $0xe8] sm:$0xff] %v1036_v10  ;;  %v1038_v14 = vadd.f32 %v1537_v21, %v893_v22 }
 0x265   :  { %1069 = vst [vmem:[#allocation9 + $0xf0] sm:$0xff] %v1037_v12 }
 0x266   :  { %1070 = vst [vmem:[#allocation9 + $0xf8] sm:$0xff] %v1038_v14 }
 0x267   :  { %1374 = shalt.err (!%p1371_p0)
}
 0x268   :  { %s1375_s10 = scalar_lea.hbm %s1588_s5, 4096 }
 0x269   :  { %p1376_p1 = scmp.ne.s32.totalorder %s1588_s5, %s1375_s10  ;;  %p1379_p2 = scmp.lt.u32.totalorder %s1375_s10, %s1588_s5 }
 0x26b   :  { %p1381_p3 = pnand %p1379_p2, %p1376_p1 }
 0x26d   :  { %1384 = shalt.err (!%p1381_p3)
}
 0x26e   :  { %s1397_s15 = smov 256   ;;  %s1398_s16 = smov 16  }
 0x26f   :  { %1082 = dma.vmem_to_hbm [thread:$0]  %s1077_s6, 4096, %s1588_s5, [#allocation5], %s1397_s15, %s1397_s15, %s1398_s16  }
 0x270   :  { %1389 = dma.done.wait [#allocation5], 4096  }
 0x271   :  { %1390 = vsyncadd [#allocation5], 4294963200 }
 0x272   :  { %1086 = vsyncpa [#allocation4], 1 }
 0x273   :  { %1087 = vsyncpa [#allocation7], 1 }
 0x274   :  { %1088 = vsyncpa [#allocation5], 1 }

</bundles_post_ra>
